<compile_context>
chip_gen: v7x
topology: tpu7x:2x2x1
jax: 0.10.0
libtpu: 0.0.40
codegen_flags: <defaults>
</compile_context>

<pallas_src>
import functools
import numpy as np
import jax
import jax.numpy as jnp
from jax.experimental import pallas as pl
from jax.experimental.pallas import tpu as pltpu

EPS = 1e-5  # PyTorch nn.LayerNorm default

# Single-buffer resident (constant index_map) weights; halves weight VMEM.
try:
    _WEIGHT_PIPE = pl.Buffered(1)
except Exception:  # very old jax without pl.Buffered -> fall back to default
    _WEIGHT_PIPE = None


def _wspec(shape, index_map):
    """BlockSpec for a weight/bias that is identical for every grid step."""
    if _WEIGHT_PIPE is None:
        return pl.BlockSpec(shape, index_map)
    return pl.BlockSpec(shape, index_map, pipeline_mode=_WEIGHT_PIPE)


def _compiler_params(vmem_estimate_bytes):
    # Explicit scoped-VMEM limit: estimate * 1.5 + 2 MiB, clamped to
    # [32 MiB, 64 MiB] so it is safe on v5e (16 MiB default) and v7x (64 MiB
    # physical).  At the test shapes this resolves to 32 MiB.
    limit = int(min(max(vmem_estimate_bytes * 3 // 2 + (2 << 20), 32 << 20),
                    64 << 20))
    return pltpu.CompilerParams(dimension_semantics=("parallel",),
                                vmem_limit_bytes=limit)


def _row_tile_target():
    # v5e/v6e (128 MiB VMEM): 512-row slabs reach ~85% of the HBM roofline.
    # v7x (64 MiB VMEM): keep 256 to leave headroom for resident weights.
    try:
        kind = jax.devices()[0].device_kind.lower()
    except Exception:
        return 256
    return 256 if ("v7" in kind or "7x" in kind) else 512


# --------------------------------------------------------------------------
# Pallas kernels
# --------------------------------------------------------------------------
def _layernorm_kernel(x_ref, g_ref, b_ref, o_ref):
    x = x_ref[...].astype(jnp.float32)
    mean = jnp.mean(x, axis=-1, keepdims=True)
    var = jnp.mean(jnp.square(x - mean), axis=-1, keepdims=True)
    y = (x - mean) * jax.lax.rsqrt(var + EPS)
    o_ref[...] = (y * g_ref[...] + b_ref[...]).astype(o_ref.dtype)


def _ln_attn_kernel(x_ref, g_ref, b_ref, wqkv_ref, bqkv_ref, wo_ref, bo_ref,
                    o_ref, attn_sc, *, n_heads):
    # One batch element per grid step; lane-dense (S, D) blocks.
    # Fused: LN(x) -> [Wq|Wk|Wv] proj -> softmax(QK^T)V per head -> Wo -> +x.
    # 1/sqrt(dk) is pre-folded into the Q columns of wqkv/bqkv.
    x = x_ref[0].astype(jnp.float32)                       # (S, D)
    d_model = x.shape[-1]
    dk = d_model // n_heads
    cdt = wqkv_ref.dtype                                   # bf16 fast / f32 exact

    mean = jnp.mean(x, axis=-1, keepdims=True)
    var = jnp.mean(jnp.square(x - mean), axis=-1, keepdims=True)
    xn = (x - mean) * jax.lax.rsqrt(var + EPS) * g_ref[...] + b_ref[...]

    # Fused QKV projection: one (S,D)@(D,3D) MXU matmul, f32 accumulation.
    qkv = jnp.dot(xn.astype(cdt), wqkv_ref[...],
                  preferred_element_type=jnp.float32) + bqkv_ref[...]
    q = qkv[:, :d_model].astype(cdt)
    k = qkv[:, d_model:2 * d_model].astype(cdt)
    v = qkv[:, 2 * d_model:].astype(cdt)

    for h in range(n_heads):                               # static loop / slices
        sl = slice(h * dk, (h + 1) * dk)
        # contract last dims of both operands -> no explicit K transpose
        s = jax.lax.dot_general(q[:, sl], k[:, sl], (((1,), (1,)), ((), ())),
                                preferred_element_type=jnp.float32)
        s = s - jnp.max(s, axis=-1, keepdims=True)
        p = jnp.exp(s)
        inv_l = pl.reciprocal(jnp.sum(p, axis=-1, keepdims=True), approx=True)
        p = (p * inv_l).astype(cdt)
        # write head output into the (S, D) scratch at a static lane offset
        attn_sc[:, sl] = jnp.dot(p, v[:, sl], preferred_element_type=jnp.float32)

    proj = jnp.dot(attn_sc[...].astype(cdt), wo_ref[...],
                   preferred_element_type=jnp.float32) + bo_ref[...]
    o_ref[0] = (x + proj).astype(o_ref.dtype)
    # TODO(synk): padding_mask support (additive -inf before softmax) omitted;
    # forward is exercised with padding_mask=None.
    # TODO(synk): for S >= ~1k (esp. v7x 64 MiB VMEM) convert to a flash-style
    # online softmax with a KV grid axis so the SxS scores never materialize,
    # and add a (B, H) grid for more megacore parallelism at small B.


def _ln_ffn_kernel(x_ref, g_ref, b_ref, w1_ref, b1_ref, w2_ref, b2_ref, o_ref):
    # Fused: x + W2 @ relu(W1 @ LayerNorm(x) + b1) + b2
    x = x_ref[...].astype(jnp.float32)
    mean = jnp.mean(x, axis=-1, keepdims=True)
    var = jnp.mean(jnp.square(x - mean), axis=-1, keepdims=True)
    xn = (x - mean) * jax.lax.rsqrt(var + EPS) * g_ref[...] + b_ref[...]
    cdt = w1_ref.dtype
    h = jnp.dot(xn.astype(cdt), w1_ref[...],
                preferred_element_type=jnp.float32) + b1_ref[...]
    h = jnp.maximum(h, 0.0)                                # ReLU
    o = jnp.dot(h.astype(cdt), w2_ref[...],
                preferred_element_type=jnp.float32) + b2_ref[...]
    o_ref[...] = (x + o).astype(o_ref.dtype)
    # TODO(synk): for large D*F on v7x (64 MiB VMEM), tile d_ff as a reduction
    # grid axis with an accumulator scratch (bias added on the last step).


# --------------------------------------------------------------------------
# Wrappers (pallas_call plumbing)
# --------------------------------------------------------------------------
def layernorm(x2d, gamma, beta, tm):
    M, D = x2d.shape
    vmem = 2 * (2 * tm * D * 4) + 2 * D * 4
    return pl.pallas_call(
        _layernorm_kernel,
        out_shape=jax.ShapeDtypeStruct((M, D), x2d.dtype),
        grid=(pl.cdiv(M, tm),),
        in_specs=[pl.BlockSpec((tm, D), lambda i: (i, 0)),
                  _wspec((1, D), lambda i: (0, 0)),
                  _wspec((1, D), lambda i: (0, 0))],
        out_specs=pl.BlockSpec((tm, D), lambda i: (i, 0)),
        compiler_params=_compiler_params(vmem),
    )(x2d, gamma.reshape(1, D), beta.reshape(1, D))


def attention_block(x, ln_g, ln_b, wqkv, bqkv, wo, bo, n_heads):
    B, S, D = x.shape
    D3 = wqkv.shape[1]
    wb = wqkv.dtype.itemsize
    vmem = (2 * (2 * S * D * 4)                 # x in + out, double-buffered
            + (D * D3 + D * D) * wb             # wqkv + wo (single-buffered)
            + (D3 + 3 * D) * 4                  # biases + LN params
            + S * D * 4                         # attention scratch
            + S * D3 * (4 + wb)                 # qkv f32 + q/k/v casts
            + 2 * S * S * 4)                    # score/prob temporaries
    kern = functools.partial(_ln_attn_kernel, n_heads=n_heads)
    return pl.pallas_call(
        kern,
        out_shape=jax.ShapeDtypeStruct((B, S, D), x.dtype),
        grid=(B,),
        in_specs=[pl.BlockSpec((1, S, D), lambda b: (b, 0, 0)),
                  _wspec((1, D), lambda b: (0, 0)),
                  _wspec((1, D), lambda b: (0, 0)),
                  _wspec((D, D3), lambda b: (0, 0)),
                  _wspec((1, D3), lambda b: (0, 0)),
                  _wspec((D, D), lambda b: (0, 0)),
                  _wspec((1, D), lambda b: (0, 0))],
        out_specs=pl.BlockSpec((1, S, D), lambda b: (b, 0, 0)),
        scratch_shapes=[pltpu.VMEM((S, D), jnp.float32)],
        input_output_aliases={0: 0},            # residual x slab reused as out
        compiler_params=_compiler_params(vmem),
    )(x, ln_g.reshape(1, D), ln_b.reshape(1, D), wqkv, bqkv.reshape(1, D3),
      wo, bo.reshape(1, D))


def ln_ffn_residual(x2d, ln_g, ln_b, w1, b1, w2, b2, tm):
    M, D = x2d.shape
    F = w1.shape[1]
    wb = w1.dtype.itemsize
    vmem = (2 * (2 * tm * D * 4)                # in + out, double-buffered
            + 2 * D * F * wb                    # w1 + w2 (single-buffered)
            + (2 * D + F + D) * 4               # LN params + biases
            + tm * F * (4 + wb))                # hidden activations
    return pl.pallas_call(
        _ln_ffn_kernel,
        out_shape=jax.ShapeDtypeStruct((M, D), x2d.dtype),
        grid=(pl.cdiv(M, tm),),
        in_specs=[pl.BlockSpec((tm, D), lambda i: (i, 0)),
                  _wspec((1, D), lambda i: (0, 0)),
                  _wspec((1, D), lambda i: (0, 0)),
                  _wspec((D, F), lambda i: (0, 0)),
                  _wspec((1, F), lambda i: (0, 0)),
                  _wspec((F, D), lambda i: (0, 0)),
                  _wspec((1, D), lambda i: (0, 0))],
        out_specs=pl.BlockSpec((tm, D), lambda i: (i, 0)),
        input_output_aliases={0: 0},            # residual slab reused as out
        compiler_params=_compiler_params(vmem),
    )(x2d, ln_g.reshape(1, D), ln_b.reshape(1, D),
      w1, b1.reshape(1, F), w2, b2.reshape(1, D))


# --------------------------------------------------------------------------
# One-time parameter preparation (hoisted out of the forward pass)
# --------------------------------------------------------------------------
def prepare_params(params, use_bf16=True):
    """Fuse Wq|Wk|Wv into one [D,3D] weight, fold 1/sqrt(dk) into the Q
    columns, and (optionally) cast matmul weights to bf16.  LN params and
    biases stay f32 (they are added to f32 accumulators)."""
    H = params["n_heads"]
    wdt = jnp.bfloat16 if use_bf16 else jnp.float32
    out = dict(n_heads=H, ln_f_g=params["ln_f_g"], ln_f_b=params["ln_f_b"],
               layers=[])
    for lp in params["layers"]:
        D = lp["wq"].shape[0]
        scale = 1.0 / float(np.sqrt(D // H))
        wqkv = jnp.concatenate([lp["wq"] * scale, lp["wk"], lp["wv"]], axis=1)
        bqkv = jnp.concatenate([lp["bq"] * scale, lp["bk"], lp["bv"]], axis=0)
        out["layers"].append(dict(
            ln1_g=lp["ln1_g"], ln1_b=lp["ln1_b"],
            ln2_g=lp["ln2_g"], ln2_b=lp["ln2_b"],
            wqkv=wqkv.astype(wdt), bqkv=bqkv,
            wo=lp["wo"].astype(wdt), bo=lp["bo"],
            w1=lp["w1"].astype(wdt), b1=lp["b1"],
            w2=lp["w2"].astype(wdt), b2=lp["b2"]))
    return out


# --------------------------------------------------------------------------
# Encoder forward (2 fused pallas_calls per layer + final LN)
# --------------------------------------------------------------------------
def encoder_forward(x, prepped):
    B, S, D = x.shape
    H = prepped["n_heads"]
    M = B * S
    tm = min(M, _row_tile_target())

    for lp in prepped["layers"]:
        # sublayer 0: x = x + Wo * SelfAttn(LayerNorm(x))   (one fused call)
        x = attention_block(x, lp["ln1_g"], lp["ln1_b"], lp["wqkv"], lp["bqkv"],
                            lp["wo"], lp["bo"], H)
        # sublayer 1: x = x + FFN(LayerNorm(x))
        x = ln_ffn_residual(x.reshape(M, D), lp["ln2_g"], lp["ln2_b"],
                            lp["w1"], lp["b1"], lp["w2"], lp["b2"],
                            tm).reshape(B, S, D)
    # final LayerNorm
    return layernorm(x.reshape(M, D), prepped["ln_f_g"], prepped["ln_f_b"],
                     tm).reshape(B, S, D)


# --------------------------------------------------------------------------
# Pure-JAX reference (for correctness check)
# --------------------------------------------------------------------------
def reference_forward(x, params):
    B, S, D = x.shape
    H = params["n_heads"]
    dk = D // H
    scale = 1.0 / float(np.sqrt(dk))

    def ln(t, g, b):
        m = jnp.mean(t, -1, keepdims=True)
        v = jnp.mean((t - m) ** 2, -1, keepdims=True)
        return (t - m) * jax.lax.rsqrt(v + EPS) * g + b

    def heads(t):
        return t.reshape(B, S, H, dk).transpose(0, 2, 1, 3)

    for lp in params["layers"]:
        xn = ln(x, lp["ln1_g"], lp["ln1_b"])
        q, k, v = (heads(xn @ lp[w] + lp[b]) for w, b in
                   (("wq", "bq"), ("wk", "bk"), ("wv", "bv")))
        s = jnp.einsum("bhqd,bhkd->bhqk", q, k) * scale
        p = jax.nn.softmax(s, axis=-1)
        a = jnp.einsum("bhqk,bhkd->bhqd", p, v).transpose(0, 2, 1, 3).reshape(B, S, D)
        x = x + (a @ lp["wo"] + lp["bo"])
        xn = ln(x, lp["ln2_g"], lp["ln2_b"])
        x = x + (jnp.maximum(xn @ lp["w1"] + lp["b1"], 0.0) @ lp["w2"] + lp["b2"])
    return ln(x, params["ln_f_g"], params["ln_f_b"])


# --------------------------------------------------------------------------
# Deterministic parameter init (PyTorch nn.Linear-style uniform)
# --------------------------------------------------------------------------
def init_params(key, n_layers, d_model, n_heads, d_ff):
    def dense(k, fan_in, fan_out):
        kw, kb = jax.random.split(k)
        lim = 1.0 / np.sqrt(fan_in)
        w = jax.random.uniform(kw, (fan_in, fan_out), jnp.float32, -lim, lim)
        b = jax.random.uniform(kb, (fan_out,), jnp.float32, -lim, lim)
        return w, b

    ks = jax.random.split(key, 7)
    wq, bq = dense(ks[0], d_model, d_model)
    wk, bk = dense(ks[1], d_model, d_model)
    wv, bv = dense(ks[2], d_model, d_model)
    wo, bo = dense(ks[3], d_model, d_model)
    w1, b1 = dense(ks[4], d_model, d_ff)
    w2, b2 = dense(ks[5], d_ff, d_model)
    layer = dict(
        wq=wq, bq=bq, wk=wk, bk=bk, wv=wv, bv=bv, wo=wo, bo=bo,
        w1=w1, b1=b1, w2=w2, b2=b2,
        ln1_g=jnp.ones((d_model,), jnp.float32), ln1_b=jnp.zeros((d_model,), jnp.float32),
        ln2_g=jnp.ones((d_model,), jnp.float32), ln2_b=jnp.zeros((d_model,), jnp.float32),
    )
    # `clones(layer, N)` deep-copies the same layer -> all N layers share the
    # same initial weights; replicate that here.
    return dict(
        n_heads=n_heads,
        layers=[dict(layer) for _ in range(n_layers)],
        ln_f_g=jnp.ones((d_model,), jnp.float32),
        ln_f_b=jnp.zeros((d_model,), jnp.float32),
    )


if __name__ == "__main__":
    B, S, D, H, F, N = 2, 8, 32, 4, 64, 2
    key = jax.random.PRNGKey(0)
    kx, kp = jax.random.split(key)
    x = jax.random.normal(kx, (B, S, D), jnp.float32)
    params = init_params(kp, N, D, H, F)

    ref = reference_forward(x, params)

    # 1) exact-precision path (f32 weights): verifies the fused kernel math.
    #    Tolerance covers the EUP approximate-reciprocal softmax normalization.
    out_f32 = jax.block_until_ready(
        encoder_forward(x, prepare_params(params, use_bf16=False)))
    np.testing.assert_allclose(np.asarray(out_f32), np.asarray(ref),
                               rtol=2e-3, atol=2e-3)

    # 2) production fast path: bf16 MXU matmul operands, f32 stats/accum.
    #    bf16 rounding changes results by a few percent vs. the f32 reference.
    out_bf16 = jax.block_until_ready(
        encoder_forward(x, prepare_params(params, use_bf16=True)))
    np.testing.assert_allclose(np.asarray(out_bf16), np.asarray(ref),
                               rtol=5e-2, atol=5e-2)

    print("KERNEL_OK")
</pallas_src>

<mosaic_0001>
module attributes {stable_mosaic.version = 11 : i64} {
  func.func @_ln_attn_kernel(%arg0: i32, %arg1: memref<1x8x32xf32, #tpu.memory_space<vmem>>, %arg2: memref<1x32xf32, #tpu.memory_space<vmem>>, %arg3: memref<1x32xf32, #tpu.memory_space<vmem>>, %arg4: memref<32x96xf32, #tpu.memory_space<vmem>>, %arg5: memref<1x96xf32, #tpu.memory_space<vmem>>, %arg6: memref<32x32xf32, #tpu.memory_space<vmem>>, %arg7: memref<1x32xf32, #tpu.memory_space<vmem>>, %arg8: memref<1x8x32xf32, #tpu.memory_space<vmem>>, %arg9: memref<8x32xf32, #tpu.memory_space<vmem>>) attributes {dimension_semantics = [#tpu.dimension_semantics<parallel>], iteration_bounds = array<i64: 2>, scalar_prefetch = 0 : i64, scratch_operands = 1 : i64, tpu.core_type = #tpu.core_type<tc>, window_params = [{transform_indices = @transform_0, window_bounds = array<i64: 1, 8, 32>}, {pipeline_mode = #tpu.pipeline_mode<synchronous>, transform_indices = @transform_1, window_bounds = array<i64: 1, 32>}, {pipeline_mode = #tpu.pipeline_mode<synchronous>, transform_indices = @transform_2, window_bounds = array<i64: 1, 32>}, {pipeline_mode = #tpu.pipeline_mode<synchronous>, transform_indices = @transform_3, window_bounds = array<i64: 32, 96>}, {pipeline_mode = #tpu.pipeline_mode<synchronous>, transform_indices = @transform_4, window_bounds = array<i64: 1, 96>}, {pipeline_mode = #tpu.pipeline_mode<synchronous>, transform_indices = @transform_5, window_bounds = array<i64: 32, 32>}, {pipeline_mode = #tpu.pipeline_mode<synchronous>, transform_indices = @transform_6, window_bounds = array<i64: 1, 32>}, {transform_indices = @transform_7, window_bounds = array<i64: 1, 8, 32>}]} {
    %c0 = arith.constant 0 : index
    %c0_0 = arith.constant 0 : index
    %c0_1 = arith.constant 0 : index
    %0 = vector.load %arg1[%c0, %c0_0, %c0_1] : memref<1x8x32xf32, #tpu.memory_space<vmem>>, vector<1x8x32xf32>
    %1 = vector.shape_cast %0 : vector<1x8x32xf32> to vector<8x32xf32>
    %cst = arith.constant dense<0.000000e+00> : vector<8xf32>
    %2 = vector.multi_reduction <add>, %1, %cst [1] : vector<8x32xf32> to vector<8xf32>
    %3 = vector.shape_cast %2 : vector<8xf32> to vector<8x1xf32>
    %cst_2 = arith.constant 3.200000e+01 : f32
    %4 = vector.broadcast %cst_2 : f32 to vector<8x1xf32>
    %5 = arith.divf %3, %4 : vector<8x1xf32>
    %6 = vector.broadcast %5 : vector<8x1xf32> to vector<8x32xf32>
    %7 = arith.subf %1, %6 : vector<8x32xf32>
    %8 = arith.mulf %7, %7 : vector<8x32xf32>
    %cst_3 = arith.constant dense<0.000000e+00> : vector<8xf32>
    %9 = vector.multi_reduction <add>, %8, %cst_3 [1] : vector<8x32xf32> to vector<8xf32>
    %10 = vector.shape_cast %9 : vector<8xf32> to vector<8x1xf32>
    %cst_4 = arith.constant 3.200000e+01 : f32
    %11 = vector.broadcast %cst_4 : f32 to vector<8x1xf32>
    %12 = arith.divf %10, %11 : vector<8x1xf32>
    %13 = vector.broadcast %5 : vector<8x1xf32> to vector<8x32xf32>
    %14 = arith.subf %1, %13 : vector<8x32xf32>
    %cst_5 = arith.constant 9.99999974E-6 : f32
    %15 = vector.broadcast %cst_5 : f32 to vector<8x1xf32>
    %16 = arith.addf %12, %15 : vector<8x1xf32>
    %17 = math.rsqrt %16 : vector<8x1xf32>
    %18 = vector.broadcast %17 : vector<8x1xf32> to vector<8x32xf32>
    %19 = arith.mulf %14, %18 : vector<8x32xf32>
    %c0_6 = arith.constant 0 : index
    %c0_7 = arith.constant 0 : index
    %20 = vector.load %arg2[%c0_6, %c0_7] : memref<1x32xf32, #tpu.memory_space<vmem>>, vector<1x32xf32>
    %21 = vector.broadcast %20 : vector<1x32xf32> to vector<8x32xf32>
    %22 = arith.mulf %19, %21 : vector<8x32xf32>
    %c0_8 = arith.constant 0 : index
    %c0_9 = arith.constant 0 : index
    %23 = vector.load %arg3[%c0_8, %c0_9] : memref<1x32xf32, #tpu.memory_space<vmem>>, vector<1x32xf32>
    %24 = vector.broadcast %23 : vector<1x32xf32> to vector<8x32xf32>
    %25 = arith.addf %22, %24 : vector<8x32xf32>
    %c0_10 = arith.constant 0 : index
    %c0_11 = arith.constant 0 : index
    %26 = vector.load %arg4[%c0_10, %c0_11] : memref<32x96xf32, #tpu.memory_space<vmem>>, vector<32x96xf32>
    %cst_12 = arith.constant dense<0.000000e+00> : vector<8x96xf32>
    %27 = tpu.matmul %25, %26, %cst_12 {dimension_numbers = #tpu.dot_dimension_numbers<[1], [0], [0], [1], [0, 0, 1, 1], [], []>} : vector<8x32xf32>, vector<32x96xf32>, vector<8x96xf32> -> vector<8x96xf32>
    %c0_13 = arith.constant 0 : index
    %c0_14 = arith.constant 0 : index
    %28 = vector.load %arg5[%c0_13, %c0_14] : memref<1x96xf32, #tpu.memory_space<vmem>>, vector<1x96xf32>
    %29 = vector.broadcast %28 : vector<1x96xf32> to vector<8x96xf32>
    %30 = arith.addf %27, %29 : vector<8x96xf32>
    %31 = vector.extract_strided_slice %30 {offsets = [0, 0], sizes = [8, 32], strides = [1, 1]} : vector<8x96xf32> to vector<8x32xf32>
    %32 = vector.extract_strided_slice %30 {offsets = [0, 32], sizes = [8, 32], strides = [1, 1]} : vector<8x96xf32> to vector<8x32xf32>
    %33 = vector.extract_strided_slice %30 {offsets = [0, 64], sizes = [8, 32], strides = [1, 1]} : vector<8x96xf32> to vector<8x32xf32>
    %34 = vector.extract_strided_slice %31 {offsets = [0, 0], sizes = [8, 8], strides = [1, 1]} : vector<8x32xf32> to vector<8x8xf32>
    %35 = vector.extract_strided_slice %32 {offsets = [0, 0], sizes = [8, 8], strides = [1, 1]} : vector<8x32xf32> to vector<8x8xf32>
    %cst_15 = arith.constant dense<0.000000e+00> : vector<8x8xf32>
    %36 = tpu.matmul %34, %35, %cst_15 {dimension_numbers = #tpu.dot_dimension_numbers<[1], [1], [0], [0], [0, 0, 1, 0], [], []>} : vector<8x8xf32>, vector<8x8xf32>, vector<8x8xf32> -> vector<8x8xf32>
    %cst_16 = arith.constant dense<0xFF800000> : vector<8xf32>
    %37 = vector.multi_reduction <maximumf>, %36, %cst_16 [1] : vector<8x8xf32> to vector<8xf32>
    %38 = vector.shape_cast %37 : vector<8xf32> to vector<8x1xf32>
    %39 = vector.broadcast %38 : vector<8x1xf32> to vector<8x8xf32>
    %40 = arith.subf %36, %39 : vector<8x8xf32>
    %41 = math.exp %40 : vector<8x8xf32>
    %cst_17 = arith.constant dense<0.000000e+00> : vector<8xf32>
    %42 = vector.multi_reduction <add>, %41, %cst_17 [1] : vector<8x8xf32> to vector<8xf32>
    %43 = vector.shape_cast %42 : vector<8xf32> to vector<8x1xf32>
    %44 = tpu.reciprocal %43 {approx = true} : vector<8x1xf32> -> vector<8x1xf32>
    %45 = vector.broadcast %44 : vector<8x1xf32> to vector<8x8xf32>
    %46 = arith.mulf %41, %45 : vector<8x8xf32>
    %47 = vector.extract_strided_slice %33 {offsets = [0, 0], sizes = [8, 8], strides = [1, 1]} : vector<8x32xf32> to vector<8x8xf32>
    %cst_18 = arith.constant dense<0.000000e+00> : vector<8x8xf32>
    %48 = tpu.matmul %46, %47, %cst_18 {dimension_numbers = #tpu.dot_dimension_numbers<[1], [0], [0], [1], [0, 0, 1, 1], [], []>} : vector<8x8xf32>, vector<8x8xf32>, vector<8x8xf32> -> vector<8x8xf32>
    %c0_19 = arith.constant 0 : index
    %c0_20 = arith.constant 0 : index
    %49 = vector.load %arg9[%c0_19, %c0_20] : memref<8x32xf32, #tpu.memory_space<vmem>>, vector<8x8xf32>
    tpu.vector_store %arg9[%c0_19, %c0_20], %48 {strides = array<i32>} : memref<8x32xf32, #tpu.memory_space<vmem>>, vector<8x8xf32>,
    %50 = vector.extract_strided_slice %31 {offsets = [0, 8], sizes = [8, 8], strides = [1, 1]} : vector<8x32xf32> to vector<8x8xf32>
    %51 = vector.extract_strided_slice %32 {offsets = [0, 8], sizes = [8, 8], strides = [1, 1]} : vector<8x32xf32> to vector<8x8xf32>
    %cst_21 = arith.constant dense<0.000000e+00> : vector<8x8xf32>
    %52 = tpu.matmul %50, %51, %cst_21 {dimension_numbers = #tpu.dot_dimension_numbers<[1], [1], [0], [0], [0, 0, 1, 0], [], []>} : vector<8x8xf32>, vector<8x8xf32>, vector<8x8xf32> -> vector<8x8xf32>
    %cst_22 = arith.constant dense<0xFF800000> : vector<8xf32>
    %53 = vector.multi_reduction <maximumf>, %52, %cst_22 [1] : vector<8x8xf32> to vector<8xf32>
    %54 = vector.shape_cast %53 : vector<8xf32> to vector<8x1xf32>
    %55 = vector.broadcast %54 : vector<8x1xf32> to vector<8x8xf32>
    %56 = arith.subf %52, %55 : vector<8x8xf32>
    %57 = math.exp %56 : vector<8x8xf32>
    %cst_23 = arith.constant dense<0.000000e+00> : vector<8xf32>
    %58 = vector.multi_reduction <add>, %57, %cst_23 [1] : vector<8x8xf32> to vector<8xf32>
    %59 = vector.shape_cast %58 : vector<8xf32> to vector<8x1xf32>
    %60 = tpu.reciprocal %59 {approx = true} : vector<8x1xf32> -> vector<8x1xf32>
    %61 = vector.broadcast %60 : vector<8x1xf32> to vector<8x8xf32>
    %62 = arith.mulf %57, %61 : vector<8x8xf32>
    %63 = vector.extract_strided_slice %33 {offsets = [0, 8], sizes = [8, 8], strides = [1, 1]} : vector<8x32xf32> to vector<8x8xf32>
    %cst_24 = arith.constant dense<0.000000e+00> : vector<8x8xf32>
    %64 = tpu.matmul %62, %63, %cst_24 {dimension_numbers = #tpu.dot_dimension_numbers<[1], [0], [0], [1], [0, 0, 1, 1], [], []>} : vector<8x8xf32>, vector<8x8xf32>, vector<8x8xf32> -> vector<8x8xf32>
    %c0_25 = arith.constant 0 : index
    %c8 = arith.constant 8 : index
    %65 = vector.load %arg9[%c0_25, %c8] : memref<8x32xf32, #tpu.memory_space<vmem>>, vector<8x8xf32>
    tpu.vector_store %arg9[%c0_25, %c8], %64 {strides = array<i32>} : memref<8x32xf32, #tpu.memory_space<vmem>>, vector<8x8xf32>,
    %66 = vector.extract_strided_slice %31 {offsets = [0, 16], sizes = [8, 8], strides = [1, 1]} : vector<8x32xf32> to vector<8x8xf32>
    %67 = vector.extract_strided_slice %32 {offsets = [0, 16], sizes = [8, 8], strides = [1, 1]} : vector<8x32xf32> to vector<8x8xf32>
    %cst_26 = arith.constant dense<0.000000e+00> : vector<8x8xf32>
    %68 = tpu.matmul %66, %67, %cst_26 {dimension_numbers = #tpu.dot_dimension_numbers<[1], [1], [0], [0], [0, 0, 1, 0], [], []>} : vector<8x8xf32>, vector<8x8xf32>, vector<8x8xf32> -> vector<8x8xf32>
    %cst_27 = arith.constant dense<0xFF800000> : vector<8xf32>
    %69 = vector.multi_reduction <maximumf>, %68, %cst_27 [1] : vector<8x8xf32> to vector<8xf32>
    %70 = vector.shape_cast %69 : vector<8xf32> to vector<8x1xf32>
    %71 = vector.broadcast %70 : vector<8x1xf32> to vector<8x8xf32>
    %72 = arith.subf %68, %71 : vector<8x8xf32>
    %73 = math.exp %72 : vector<8x8xf32>
    %cst_28 = arith.constant dense<0.000000e+00> : vector<8xf32>
    %74 = vector.multi_reduction <add>, %73, %cst_28 [1] : vector<8x8xf32> to vector<8xf32>
    %75 = vector.shape_cast %74 : vector<8xf32> to vector<8x1xf32>
    %76 = tpu.reciprocal %75 {approx = true} : vector<8x1xf32> -> vector<8x1xf32>
    %77 = vector.broadcast %76 : vector<8x1xf32> to vector<8x8xf32>
    %78 = arith.mulf %73, %77 : vector<8x8xf32>
    %79 = vector.extract_strided_slice %33 {offsets = [0, 16], sizes = [8, 8], strides = [1, 1]} : vector<8x32xf32> to vector<8x8xf32>
    %cst_29 = arith.constant dense<0.000000e+00> : vector<8x8xf32>
    %80 = tpu.matmul %78, %79, %cst_29 {dimension_numbers = #tpu.dot_dimension_numbers<[1], [0], [0], [1], [0, 0, 1, 1], [], []>} : vector<8x8xf32>, vector<8x8xf32>, vector<8x8xf32> -> vector<8x8xf32>
    %c0_30 = arith.constant 0 : index
    %c16 = arith.constant 16 : index
    %81 = vector.load %arg9[%c0_30, %c16] : memref<8x32xf32, #tpu.memory_space<vmem>>, vector<8x8xf32>
    tpu.vector_store %arg9[%c0_30, %c16], %80 {strides = array<i32>} : memref<8x32xf32, #tpu.memory_space<vmem>>, vector<8x8xf32>,
    %82 = vector.extract_strided_slice %31 {offsets = [0, 24], sizes = [8, 8], strides = [1, 1]} : vector<8x32xf32> to vector<8x8xf32>
    %83 = vector.extract_strided_slice %32 {offsets = [0, 24], sizes = [8, 8], strides = [1, 1]} : vector<8x32xf32> to vector<8x8xf32>
    %cst_31 = arith.constant dense<0.000000e+00> : vector<8x8xf32>
    %84 = tpu.matmul %82, %83, %cst_31 {dimension_numbers = #tpu.dot_dimension_numbers<[1], [1], [0], [0], [0, 0, 1, 0], [], []>} : vector<8x8xf32>, vector<8x8xf32>, vector<8x8xf32> -> vector<8x8xf32>
    %cst_32 = arith.constant dense<0xFF800000> : vector<8xf32>
    %85 = vector.multi_reduction <maximumf>, %84, %cst_32 [1] : vector<8x8xf32> to vector<8xf32>
    %86 = vector.shape_cast %85 : vector<8xf32> to vector<8x1xf32>
    %87 = vector.broadcast %86 : vector<8x1xf32> to vector<8x8xf32>
    %88 = arith.subf %84, %87 : vector<8x8xf32>
    %89 = math.exp %88 : vector<8x8xf32>
    %cst_33 = arith.constant dense<0.000000e+00> : vector<8xf32>
    %90 = vector.multi_reduction <add>, %89, %cst_33 [1] : vector<8x8xf32> to vector<8xf32>
    %91 = vector.shape_cast %90 : vector<8xf32> to vector<8x1xf32>
    %92 = tpu.reciprocal %91 {approx = true} : vector<8x1xf32> -> vector<8x1xf32>
    %93 = vector.broadcast %92 : vector<8x1xf32> to vector<8x8xf32>
    %94 = arith.mulf %89, %93 : vector<8x8xf32>
    %95 = vector.extract_strided_slice %33 {offsets = [0, 24], sizes = [8, 8], strides = [1, 1]} : vector<8x32xf32> to vector<8x8xf32>
    %cst_34 = arith.constant dense<0.000000e+00> : vector<8x8xf32>
    %96 = tpu.matmul %94, %95, %cst_34 {dimension_numbers = #tpu.dot_dimension_numbers<[1], [0], [0], [1], [0, 0, 1, 1], [], []>} : vector<8x8xf32>, vector<8x8xf32>, vector<8x8xf32> -> vector<8x8xf32>
    %c0_35 = arith.constant 0 : index
    %c24 = arith.constant 24 : index
    %97 = vector.load %arg9[%c0_35, %c24] : memref<8x32xf32, #tpu.memory_space<vmem>>, vector<8x8xf32>
    tpu.vector_store %arg9[%c0_35, %c24], %96 {strides = array<i32>} : memref<8x32xf32, #tpu.memory_space<vmem>>, vector<8x8xf32>,
    %c0_36 = arith.constant 0 : index
    %c0_37 = arith.constant 0 : index
    %98 = vector.load %arg9[%c0_36, %c0_37] : memref<8x32xf32, #tpu.memory_space<vmem>>, vector<8x32xf32>
    %c0_38 = arith.constant 0 : index
    %c0_39 = arith.constant 0 : index
    %99 = vector.load %arg6[%c0_38, %c0_39] : memref<32x32xf32, #tpu.memory_space<vmem>>, vector<32x32xf32>
    %cst_40 = arith.constant dense<0.000000e+00> : vector<8x32xf32>
    %100 = tpu.matmul %98, %99, %cst_40 {dimension_numbers = #tpu.dot_dimension_numbers<[1], [0], [0], [1], [0, 0, 1, 1], [], []>} : vector<8x32xf32>, vector<32x32xf32>, vector<8x32xf32> -> vector<8x32xf32>
    %c0_41 = arith.constant 0 : index
    %c0_42 = arith.constant 0 : index
    %101 = vector.load %arg7[%c0_41, %c0_42] : memref<1x32xf32, #tpu.memory_space<vmem>>, vector<1x32xf32>
    %102 = vector.broadcast %101 : vector<1x32xf32> to vector<8x32xf32>
    %103 = arith.addf %100, %102 : vector<8x32xf32>
    %104 = arith.addf %1, %103 : vector<8x32xf32>
    %c0_43 = arith.constant 0 : index
    %c0_44 = arith.constant 0 : index
    %c0_45 = arith.constant 0 : index
    %105 = vector.load %arg8[%c0_43, %c0_44, %c0_45] : memref<1x8x32xf32, #tpu.memory_space<vmem>>, vector<1x8x32xf32>
    %106 = vector.shape_cast %105 : vector<1x8x32xf32> to vector<8x32xf32>
    %107 = vector.shape_cast %104 : vector<8x32xf32> to vector<1x8x32xf32>
    tpu.vector_store %arg8[%c0_43, %c0_44, %c0_45], %107 {strides = array<i32>} : memref<1x8x32xf32, #tpu.memory_space<vmem>>, vector<1x8x32xf32>,
    return
  }
  func.func @transform_0(%arg0: i32) -> (i32, i32, i32) {
    %c0_i32 = arith.constant 0 : i32
    %c0_i32_0 = arith.constant 0 : i32
    %c0_i32_1 = arith.constant 0 : i32
    return %arg0, %c0_i32, %c0_i32_0 : i32, i32, i32
  }
  func.func @transform_1(%arg0: i32) -> (i32, i32) {
    %c0_i32 = arith.constant 0 : i32
    %c0_i32_0 = arith.constant 0 : i32
    %c0_i32_1 = arith.constant 0 : i32
    return %c0_i32, %c0_i32_0 : i32, i32
  }
  func.func @transform_2(%arg0: i32) -> (i32, i32) {
    %c0_i32 = arith.constant 0 : i32
    %c0_i32_0 = arith.constant 0 : i32
    %c0_i32_1 = arith.constant 0 : i32
    return %c0_i32, %c0_i32_0 : i32, i32
  }
  func.func @transform_3(%arg0: i32) -> (i32, i32) {
    %c0_i32 = arith.constant 0 : i32
    %c0_i32_0 = arith.constant 0 : i32
    %c0_i32_1 = arith.constant 0 : i32
    return %c0_i32, %c0_i32_0 : i32, i32
  }
  func.func @transform_4(%arg0: i32) -> (i32, i32) {
    %c0_i32 = arith.constant 0 : i32
    %c0_i32_0 = arith.constant 0 : i32
    %c0_i32_1 = arith.constant 0 : i32
    return %c0_i32, %c0_i32_0 : i32, i32
  }
  func.func @transform_5(%arg0: i32) -> (i32, i32) {
    %c0_i32 = arith.constant 0 : i32
    %c0_i32_0 = arith.constant 0 : i32
    %c0_i32_1 = arith.constant 0 : i32
    return %c0_i32, %c0_i32_0 : i32, i32
  }
  func.func @transform_6(%arg0: i32) -> (i32, i32) {
    %c0_i32 = arith.constant 0 : i32
    %c0_i32_0 = arith.constant 0 : i32
    %c0_i32_1 = arith.constant 0 : i32
    return %c0_i32, %c0_i32_0 : i32, i32
  }
  func.func @transform_7(%arg0: i32) -> (i32, i32, i32) {
    %c0_i32 = arith.constant 0 : i32
    %c0_i32_0 = arith.constant 0 : i32
    %c0_i32_1 = arith.constant 0 : i32
    return %arg0, %c0_i32, %c0_i32_0 : i32, i32, i32
  }
}

</mosaic_0001>

<bundles_post_ra>
// kernel: tpu_custom_call.1
= control target key start
LH: loop header
LB: loop body
LE: loop exit
PB: predicated region body
PF: predicated region fallthrough
CT: control target
= control target key end

     0   :  { %12 = vsyncpa [#allocation4], 0  ;;  %s2004_s0 = inlined_call_operand.hbm [shape: f32[2,8,32], index: 0, kind: input, shape index: {}, may-alias: {0,7}]   ;;  %s2005_s1 = inlined_call_operand.vmem [shape: f32[1,32], index: 1, kind: input, shape index: {}]   ;;  %s2006_s2 = inlined_call_operand.vmem [shape: f32[1,32], index: 2, kind: input, shape index: {}]   ;;  %s2007_s3 = inlined_call_operand.vmem [shape: f32[32,96], index: 3, kind: input, shape index: {}]   ;;  %s2008_s4 = inlined_call_operand.vmem [shape: f32[1,96], index: 4, kind: input, shape index: {}]   ;;  %s2009_s5 = inlined_call_operand.hbm [shape: f32[32,32], index: 5, kind: input, shape index: {}]   ;;  %s2010_s6 = inlined_call_operand.vmem [shape: f32[1,32], index: 6, kind: input, shape index: {}]   ;;  %s2011_s7 = inlined_call_operand.hbm [shape: f32[2,8,32], index: 7, kind: output, shape index: {}, may-alias: {0,7}]  }
   0x1   :  { %14 = vsyncpa [#allocation4 + $0x1], 0 }
   0x2   :  { %15 = vsyncpa [#allocation7], 0 }
   0x3   :  { %16 = vsyncpa [#allocation5], 0 }
   0x4   :  { %18 = vsyncpa [#allocation5 + $0x1], 0  ;;  %s1703_s24 = smov 0   ;;  %s1705_s25 = smov 0  }
   0x5   :  { %s1707_s26 = smov 0   ;;  %s1709_s27 = smov 0  }
   0x6 LB: > { %s1724_s28 = sadd.s32 4294967295, %s1639_s27   ;;  %s1285_s29 = sadd.s32 4294967294, %s1639_s27   ;;  %s1639_s27 = sphi %s1709_s27, %s2031_s27   ;;  %s1635_s26 = sphi %s1707_s26, %s2030_s26   ;;  %s1631_s25 = sphi %s1705_s25, %s2029_s25   ;;  %s1627_s24 = sphi %s1703_s24, %s2028_s24  }
   0x7   : > { %p44_p0 = scmp.ne.s32.totalorder %s1631_s25, %s1627_s24  ;;  %p2012_p1 = scmp.eq.s32.totalorder %s1724_s28, 0 }
   0x8   : > { %p200_p3 = scmp.eq.s32.totalorder %s1285_s29, 1  ;;  %p1286_p5 = scmp.ge.s32.totalorder %s1639_s27, 1 }
   0x9   : > { %p1733_p4 = por %p2012_p1, %p44_p0  ;;  %p207_p7 = scmp.lt.s32.totalorder %s1639_s27, 3 }
   0xa   : > { %p1738_p6 = por %p200_p3, %p44_p0  ;;  %s1641_s10 = smov [#allocation6]  }
   0xb   : > { %s2015_s30 = scalar_select %p1733_p4, 1, 0 }
   0xc   : > { %s2016_s8 = scalar_select %p1738_p6, 1, 0 }
   0xd   : > { %p1743_p8 = pnand %p1286_p5, %p207_p7  ;;  %s231_s11 = sshll.u32 %s1641_s10, 4  ;;  %s1747_s11 = int_to_ptr.vmem [resolvable:$true] %s231_s11 }
   0xe   : > { %s1759_s13 = sadd.s32 1, %s1639_s27   ;;  %s31_s14 = sadd.s32 1, %s1635_s26 }
   0xf   : > { %s2017_s9 = scalar_select %p1743_p8, 1, 0 }
  0x10   : > { %p1425_p9 = pneg %p1743_p8  ;;  %s28_s15 = ssub.s32 %s1639_s27, %s1759_s13 }
  0x11   : > { %s1511_s18 = scalar_lea.hbm %s2009_s5, 512 }
  0x12   : > { %p1754_p11 = pnand %p1425_p9, %p2012_p1  ;;  %p1512_p12 = scmp.ne.s32.totalorder %s2009_s5, %s1511_s18 }
  0x13   : > { %p1518_p5 = scmp.lt.u32.totalorder %s1511_s18, %s2009_s5 }
  0x14   : > { %p1513_p13 = pneg %p1754_p11 }
  0x16   : > { %p1514_p0 = pnand %p1513_p13, %p1512_p12 }
  0x18   : > { %p1515_p3 = pneg %p1514_p0 }
  0x1a   : > { %p1520_p7 = pnand %p1518_p5, %p1515_p3 }
  0x1c   : > { %1523 = shalt.err (!%p1520_p7)
}
  0x1d   : > { %s1524_s23 = scalar_lea.vmem %s1747_s11, 512  ;;  %p1532_p2 = scmp.lt.s32.totalorder %s1747_s11, %s1747_s11 }
  0x1e   : > { %p1525_p9 = scmp.ne.s32.totalorder %s1747_s11, %s1524_s23  ;;  %p1533_p6 = scmp.lt.s32.totalorder %s1524_s23, %s1524_s23 }
  0x20   : > { %p1527_p10 = pnand %p1525_p9, %p1513_p13  ;;  %p1534_p4 = por %p1533_p6, %p1532_p2 }
  0x22   : > { %p1528_p1 = pneg %p1527_p10 }
  0x24   : > { %p1535_p8 = pnand %p1534_p4, %p1528_p1 }
  0x26   : > { %1538 = shalt.err (!%p1535_p8)
}
  0x27   : > { %s1642_s29 = smov 128   ;;  %s1643_s10 = smov 8  }
  0x28   : > { %1428 = dma.hbm_to_vmem [thread:$0]  (!%p1754_p11), %s2009_s5, 512, %s1747_s11, [#allocation7], %s1642_s29, %s1642_s29, %s1643_s10  }
  0x29   : > { %p29_p2 = scmp.eq.s32.totalorder %s28_s15, 0  ;;  %p38_p1 = scmp.ne.s32.totalorder %s1635_s26, %s1631_s25 }
  0x2a   : > { %p39_p4 = scmp.eq.s32.totalorder %s1639_s27, 0  ;;  %p1438_p6 = scmp.lt.s32.totalorder %s1639_s27, 2 }
  0x2b   : > { %s1790_s18 = scalar_select %p29_p2, %s1635_s26, %s31_s14  }
  0x2c   : > { %p40_p8 = por %p39_p4, %p38_p1  ;;  %p2019_p10 = scmp.eq.s32.totalorder %s1724_s28, 1 }
  0x2d   : > { %s248_s20 = sand.u32 1, %s1635_s26   ;;  %s1290_s21 = sshll.u32 %s1639_s27, 7 }
  0x2e   : > { %p1794_p12 = por %p2019_p10, %p38_p1  ;;  %s1289_s22 = sshll.u32 %s248_s20, 3 }
  0x2f   : > { %s1803_s16 = scalar_lea.hbm %s2004_s0, %s1290_s21  ;;  %s252_s11 = scalar_lea.vmem [#allocation3], %s1289_s22 }
  0x30   : > { %s259_s14 = sshll.u32 %s252_s11, 4  ;;  %p1805_p11 = pnand %p1438_p6, %p40_p8  ;;  %s1809_s14 = int_to_ptr.vmem [resolvable:$true] %s259_s14 }
  0x31   : > { %s249_s29 = scalar_lea.sflag [#allocation4], %s248_s20  ;;  %s1539_s10 = scalar_lea.hbm %s1803_s16, 128 }
  0x32   : > { %p1540_p13 = scmp.ne.s32.totalorder %s1803_s16, %s1539_s10  ;;  %p1541_p0 = pneg %p1805_p11 }
  0x33   : > { %s1544_s22 = scalar_lea.hbm %s2004_s0, 256  ;;  %p1545_p7 = scmp.lt.u32.totalorder %s1803_s16, %s2004_s0 }
  0x34   : > { %p1542_p3 = pnand %p1541_p0, %p1540_p13  ;;  %p1546_p9 = scmp.lt.u32.totalorder %s1544_s22, %s1539_s10 }
  0x35   : > { %p1548_p1 = scmp.lt.u32.totalorder %s1539_s10, %s1803_s16 }
  0x36   : > { %p1543_p5 = pneg %p1542_p3  ;;  %p1547_p2 = por %p1546_p9, %p1545_p7 }
  0x38   : > { %p1549_p4 = por %p1548_p1, %p1547_p2 }
  0x3a   : > { %p1550_p6 = pnand %p1549_p4, %p1543_p5 }
  0x3c   : > { %1553 = shalt.err (!%p1550_p6)
}
  0x3d   : > { %s1554_s20 = scalar_lea.vmem %s1809_s14, 128  ;;  %s1644_s11 = smov [#allocation3]  }
  0x3e   : > { %p1555_p8 = scmp.ne.s32.totalorder %s1809_s14, %s1554_s20  ;;  %s1559_s17 = sshll.u32 %s1644_s11, 4  ;;  %s1560_s17 = int_to_ptr.vmem [resolvable:$false] %s1559_s17 }
  0x3f   : > { %s1561_s21 = scalar_lea.vmem %s1560_s17, 256  ;;  %p1562_p3 = scmp.lt.s32.totalorder %s1809_s14, %s1560_s17 }
  0x40   : > { %p1557_p10 = pnand %p1555_p8, %p1541_p0  ;;  %p1563_p7 = scmp.lt.s32.totalorder %s1561_s21, %s1554_s20 }
  0x42   : > { %p1558_p13 = pneg %p1557_p10  ;;  %p1564_p9 = por %p1563_p7, %p1562_p3 }
  0x44   : > { %p1565_p2 = pnand %p1564_p9, %p1558_p13 }
  0x46   : > { %1568 = shalt.err (!%p1565_p2)
}
  0x47   : > { %1432 = dma.hbm_to_vmem [thread:$0]  (!%p1805_p11), %s1803_s16, 128, %s1809_s14, %s249_s29  }
  0x48   : > { %p2022_p5 = scmp.ne.s32.totalorder %s2017_s9, 0 }
  0x49   : > { %s1839_s10 = sand.u32 (!%p2022_p5), 1, %s1631_s25   ;;  %p2023_p0 = scmp.ne.s32.totalorder (!%p2022_p5), %s2015_s30, 0 }
  0x4a   : > { %268 = sbr.rel (%p2022_p5) target bundleno = 2360 (0x938), region = 48  ;;  %s1292_s22 = sshll.u32 (!%p2022_p5), %s1839_s10, 3 }
  0x4b   : > { %s271_s12 = scalar_lea.sflag (!%p2022_p5), [#allocation4], %s1839_s10  ;;  %s274_s23 = scalar_lea.vmem (!%p2022_p5), [#allocation3], %s1292_s22 }
  0x51   : > { %1614 = dma.done.wait (%p2023_p0), %s271_s12, 128  }
  0x52   : > { %1616 = vsyncadd (%p2023_p0), %s271_s12, 4294967168  ;;  %p2024_p11 = scmp.eq.s32.totalorder %s1724_s28, 0 }
  0x54   : > { %1618 = dma.done.wait (%p2024_p11), [#allocation7], 512   ;;  %p2025_p1 = pmov %p2024_p11 }
  0x55   : > { %vm310_vm0 = vcmask 261120   ;;  %v1853_v0 = vld [vmem:[%s274_s23] sm:$0xff]  ;;  %v341_v7 = vld [vmem:[%s2007_s3] sm:$0xff]  ;;  %v1645_v10 = vmov 0.0|0.0   ;;  %v344_v12 = vld [vmem:[%s2007_s3 + $0x18] sm:$0xff]  ;;  %vm1646_vm1 = vmmov 0  }
  0x56   : > { %1620 = vsyncadd (%p2025_p1), [#allocation7], 4294966784  ;;  %v311_v1 = vsel %vm310_vm0, %v1853_v0, 0.0  ;;  %v342_v8 = vld [vmem:[%s2007_s3 + $0x8] sm:$0xff]  ;;  %v343_v9 = vld [vmem:[%s2007_s3 + $0x10] sm:$0xff]  ;;  %1405 = vmatprep.subr.bf16.mxu0 %v1645_v10  ;;  %v1647_v13 = vmov 0.0  }
  0x57   : > { %312 = vadd.xlane.f32.xlu0 %v311_v1  ;;  %v1406_v11 = vpack.c.bf16 %v342_v8, %v341_v7  ;;  %1351 = vmatprep.mubr.msk.f32.mxu0 %vm1646_vm1, %v1647_v13  ;;  %v1409_v14 = vpack.c.bf16 %v344_v12, %v343_v9  ;;  %v1295_v19 = vld [vmem:[%s2005_s1] ss:$0 sm:$0xff]  ;;  %s1648_s16 = smov 64   ;;  %s1649_s14 = smov 96   ;;  %vm428_vm2 = vcmask 64512   ;;  %vm760_vm3 = vcmask 130112  }
  0x58   : > { %1354 = vmatprep.subr.mxu1 %v1647_v13  ;;  %1356 = vmatprep.mubr.msk.f32.mxu1 %vm1646_vm1, %v1647_v13  ;;  %v1296_v21 = vld [vmem:[%s2006_s2] ss:$0 sm:$0xff]  ;;  %s1650_s15 = smov 88   ;;  %s1651_s29 = smov 120   ;;  %vm931_vm4 = vcmask 195712   ;;  %vm1102_vm5 = vcmask 261312  }
  0x59   : > { %1407 = vmatpush3.bf16.msra.mxu0 %v1406_v11  ;;  %v1297_v24 = vld [vmem:[%s2008_s4] ss:$0 sm:$0xff]  ;;  %s1652_s20 = smov 80   ;;  %s1653_s11 = smov 112  }
  0x5a   : > { %1408 = vmatprep.subr.bf16.mxu0 %v1645_v10  ;;  %s1654_s17 = smov 72   ;;  %s1655_s21 = smov 104  }
  0x5b   : > { %s1656_s12 = smov 48   ;;  %s1657_s23 = smov 56  }
  0x5c   : > { %s1658_s30 = smov 40   ;;  %s1659_s9 = smov 8  }
  0x5d   : > { %1410 = vmatpush3.bf16.msra.mxu0 %v1409_v14 }
  0x5e   : > { %1374 = vmatprep.subr.mxu0 %v1647_v13 }
  0xe4   : > { %v313_v2 = vpop.xlane.xlu0 %312 }
  0xe5   : > { %v315_v3 = vmul.f32 0.03125, %v313_v2 }
  0xe7   : > { %v316_v4 = vsub.f32 %v1853_v0, %v315_v3 }
  0xe9   : > { %v317_v5 = vmul.f32 %v316_v4, %v316_v4 }
  0xeb   : > { %v318_v6 = vsel %vm310_vm0, %v317_v5, 0.0 }
  0xec   : > { %319 = vadd.xlane.f32.xlu0 %v318_v6 }
 0x179   : > { %v320_v15 = vpop.xlane.xlu0 %319 }
 0x17a   : > { %v321_v16 = vmul.f32 0.03125, %v320_v15 }
 0x17c   : > { %v322_v17 = vadd.f32 1e-05, %v321_v16 }
 0x17e   : > { %1493 = vrsqrt.f32 %v322_v17 }
 0x188   : > { %v1494_v18 = vpop.eup %1493 }
 0x189   : > { %v324_v20 = vmul.f32 %v1494_v18, %v316_v4 }
 0x18b   : > { %v332_v22 = vmul.f32 %v1295_v19, %v324_v20 }
 0x18d   : > { %v340_v23 = vadd.f32 %v1296_v21, %v332_v22 }
 0x18f   : > { %1352 = vmatmul.mubr.msk.f32.vlgmr.msra.gmra.mrb[0].mxu0 %vm310_vm0, %v340_v23 }
 0x190   : > { %1376 = vmatprep.mubr.msk.f32.mxu0 %vm1646_vm1, %v1647_v13 }
 0x262   : > { %v421_v25 = vpop.f32.mrb[0].mxu0 }
 0x263   : > { %v1891_v26 = vadd.f32 %v1297_v24, %v421_v25  ;;  %v1353_v27 = vpop.f32.mrb[1].mxu0  ;;  %v1105_v24 = vld [vmem:[#allocation6] sm:$0xff]  ;;  %v1106_v25 = vld [vmem:[#allocation6 + $0x8] sm:$0xff] }
 0x264   : > { %v1107_v27 = vld [vmem:[#allocation6 + $0x10] sm:$0xff] }
 0x265   : > { %514 = vrot.lane.b32.xlu0 %v1891_v26, %s1648_s16  ;;  %426 = vrot.lane.b32.xlu1 %v1891_v26, %s1649_s14  ;;  %s1660_s16 = smov 16   ;;  %s1661_s14 = smov 24  }
 0x269   : > { %593 = vrot.lane.b32.xlu0 %v1891_v26, %s1650_s15 }
 0x26d   : > { %591 = vrot.lane.b32.xlu0 %v1891_v26, %s1651_s29 }
 0x2d7   : > { %v427_v28 = vpop.permute.xlu1 %426  ;;  %v515_v29 = vpop.permute.xlu0 %514 }
 0x2d8   : > { %1355 = vmatpush3.xpose.msk.msra.mxu1 %vm428_vm2, %v427_v28  ;;  %v1108_v28 = vld [vmem:[#allocation6 + $0x18] sm:$0xff] }
 0x2d9   : > { %1359 = vmatprep.subr.mxu1 %v1647_v13 }
 0x2db   : > { %1357 = vmatmul.mubr.msk.f32.vlgmr.msra.gmra.mrb[0].mxu1 %vm428_vm2, %v1891_v26  ;;  %v594_v39 = vpop.permute.xlu0 %593 }
 0x2dc   : > { %1360 = vmatpush3.msra.mxu1 %v515_v29  ;;  %1361 = vmatprep.mubr.msk.f32.mxu1 %vm1646_vm1, %v1647_v13  ;;  %v1415_v29 = vpack.c.bf16 %v1108_v28, %v1107_v27 }
 0x2dd   : > { %1364 = vmatprep.subr.mxu1 %v1647_v13 }
 0x2df   : > { %v592_v40 = vpop.permute.xlu0 %591 }
 0x3ae   : > { %v499_v30 = vpop.f32.mrb[0].mxu1 }
 0x3af   : > { %v1358_v31 = vpop.f32.mrb[1].mxu1  ;;  %v503_v32 = vsel %vm428_vm2, %v499_v30, -inf }
 0x3b0   : > { %504 = vmax.xlane.f32.xlu1 %v503_v32 }
 0x3c1   : > { %764 = vrot.lane.b32.xlu1 %v1891_v26, %s1652_s20  ;;  %s1314_s20 = sshll.u32 %s1724_s28, 7  ;;  %s1192_s28 = scalar_lea.sflag [#allocation5], %s1839_s10 }
 0x43d   : > { %v505_v33 = vpop.xlane.xlu1 %504 }
 0x43e   : > { %v506_v34 = vsub.f32 %v499_v30, %v505_v33 }
 0x440   : > { %v507_v35 = vmul.f32 1.442695, %v506_v34 }
 0x441   : > { %v765_v36 = vpop.permute.xlu1 %764 }
 0x442   : > { %1495 = vpow2.f32 %v507_v35  ;;  %1375 = vmatpush3.xpose.msk.msra.mxu0 %vm428_vm2, %v765_v36 }
 0x443   : > { %1384 = vmatprep.subr.mxu0 %v1647_v13 }
 0x44c   : > { %v1496_v37 = vpop.eup %1495 }
 0x44d   : > { %v509_v38 = vsel %vm428_vm2, %v1496_v37, 0.0 }
 0x44e   : > { %510 = vadd.xlane.f32.xlu0 %v509_v38  ;;  %v1311_v38 = vld [vmem:[%s2010_s6] ss:$0 sm:$0xff] }
 0x464   : > { %762 = vrot.lane.b32.xlu0 %v1891_v26, %s1653_s11  ;;  %s308_s11 = scalar_lea.vmem [#allocation8], %s1292_s22  ;;  %s1662_s22 = smov [#allocation8]  }
 0x468   : > { %935 = vrot.lane.b32.xlu0 %v1891_v26, %s1654_s17  ;;  %s1205_s17 = sshll.u32 %s308_s11, 4  ;;  %s1961_s17 = int_to_ptr.vmem [resolvable:$true] %s1205_s17 }
 0x46c   : > { %933 = vrot.lane.b32.xlu0 %v1891_v26, %s1655_s21 }
 0x4db   : > { %v511_v41 = vpop.xlane.xlu0 %510 }
 0x4dc   : > { %1497 = vrcp.f32 %v511_v41 }
 0x4df   : > { %v763_v42 = vpop.permute.xlu0 %762 }
 0x4e0   : > { %1377 = vmatmul.mubr.msk.f32.vlgmr.msra.gmra.mrb[2].mxu0 %vm428_vm2, %v763_v42 }
 0x4e1   : > { %1386 = vmatprep.mubr.msk.f32.mxu0 %vm1646_vm1, %v1647_v13 }
 0x4e3   : > { %v936_v43 = vpop.permute.xlu0 %935 }
 0x4e4   : > { %1385 = vmatpush3.xpose.msk.msra.mxu0 %vm428_vm2, %v936_v43 }
 0x4e5   : > { %1411 = vmatprep.subr.bf16.mxu0 %v1645_v10 }
 0x4e6   : > { %v1498_v44 = vpop.eup %1497 }
 0x4e7   : > { %v513_v45 = vmul.f32 %v1498_v44, %v1496_v37  ;;  %v934_v46 = vpop.permute.xlu0 %933 }
 0x4e8   : > { %1387 = vmatmul.mubr.msk.f32.vlgmr.msra.gmra.mrb[4].mxu0 %vm428_vm2, %v934_v46 }
 0x4e9   : > { %1362 = vmatmul.mubr.msk.f32.vlgmr.msra.gmra.mrb[2].mxu1 %vm428_vm2, %v513_v45  ;;  %1402 = vmatprep.mubr.msk.f32.mxu0 %vm1646_vm1, %v1647_v13 }
 0x4ea   : > { %1365 = vmatpush3.xpose.msk.msra.mxu1 %vm428_vm2, %v594_v39  ;;  %1366 = vmatprep.mubr.msk.f32.mxu1 %vm1646_vm1, %v1647_v13 }
 0x4eb   : > { %1369 = vmatprep.subr.mxu1 %v1647_v13 }
 0x4ed   : > { %1367 = vmatmul.mubr.msk.f32.vlgmr.msra.gmra.mrb[4].mxu1 %vm428_vm2, %v592_v40 }
 0x4ee   : > { %1371 = vmatprep.mubr.msk.f32.mxu1 %vm1646_vm1, %v1647_v13 }
 0x5b3   : > { %v836_v47 = vpop.f32.mrb[2].mxu0 }
 0x5b4   : > { %v1378_v48 = vpop.f32.mrb[3].mxu0  ;;  %v840_v49 = vsel %vm428_vm2, %v836_v47, -inf }
 0x5b5   : > { %841 = vmax.xlane.f32.xlu1 %v840_v49 }
 0x5bb   : > { %v1007_v50 = vpop.f32.mrb[4].mxu0 }
 0x5bc   : > { %v586_v51 = vpop.f32.mrb[2].mxu1  ;;  %v1388_v52 = vpop.f32.mrb[5].mxu0  ;;  %v1011_v57 = vsel %vm428_vm2, %v1007_v50, -inf }
 0x5bd   : > { %590 = vst.msk [vmem:[#allocation2] sm:$0xff] %vm428_vm2, %v586_v51  ;;  %v1363_v53 = vpop.f32.mrb[3].mxu1 }
 0x5c0   : > { %v665_v54 = vpop.f32.mrb[4].mxu1 }
 0x5c1   : > { %v1368_v55 = vpop.f32.mrb[5].mxu1  ;;  %v669_v56 = vsel %vm428_vm2, %v665_v54, -inf }
 0x5c2   : > { %670 = vmax.xlane.f32.xlu0 %v669_v56 }
 0x5c6   : > { %1012 = vmax.xlane.f32.xlu0 %v1011_v57 }
 0x642   : > { %v842_v58 = vpop.xlane.xlu1 %841 }
 0x643   : > { %v843_v59 = vsub.f32 %v836_v47, %v842_v58 }
 0x645   : > { %v844_v60 = vmul.f32 1.442695, %v843_v59 }
 0x647   : > { %1499 = vpow2.f32 %v844_v60 }
 0x64f   : > { %v671_v61 = vpop.xlane.xlu0 %670 }
 0x650   : > { %v672_v62 = vsub.f32 %v665_v54, %v671_v61 }
 0x651   : > { %v1500_v63 = vpop.eup %1499 }
 0x652   : > { %v673_v1 = vmul.f32 1.442695, %v672_v62  ;;  %v846_v2 = vsel %vm428_vm2, %v1500_v63, 0.0 }
 0x653   : > { %847 = vadd.xlane.f32.xlu0 %v846_v2  ;;  %v1013_v3 = vpop.xlane.xlu0 %1012 }
 0x654   : > { %1501 = vpow2.f32 %v673_v1  ;;  %v1014_v4 = vsub.f32 %v1007_v50, %v1013_v3 }
 0x656   : > { %v1015_v5 = vmul.f32 1.442695, %v1014_v4 }
 0x658   : > { %1503 = vpow2.f32 %v1015_v5 }
 0x65e   : > { %v1502_v6 = vpop.eup %1501 }
 0x65f   : > { %v675_v7 = vsel %vm428_vm2, %v1502_v6, 0.0 }
 0x660   : > { %676 = vadd.xlane.f32.xlu0 %v675_v7 }
 0x662   : > { %v1504_v8 = vpop.eup %1503 }
 0x663   : > { %v1017_v9 = vsel %vm428_vm2, %v1504_v8, 0.0 }
 0x664   : > { %1018 = vadd.xlane.f32.xlu1 %v1017_v9 }
 0x675   : > { %851 = vrot.lane.b32.xlu1 %v1891_v26, %s1656_s12 }
 0x676   : > { %680 = vrot.lane.b32.xlu0 %v1891_v26, %s1657_s23  ;;  %s1959_s23 = scalar_lea.hbm %s2011_s7, %s1314_s20 }
 0x679   : > { %1022 = vrot.lane.b32.xlu1 %v1891_v26, %s1658_s30  ;;  %v1412_v26 = vpack.c.bf16 %v1106_v25, %v1105_v24  ;;  %s1569_s30 = scalar_lea.vmem %s1961_s17, 128 }
 0x67a   : > { %p1570_p4 = scmp.ne.s32.totalorder %s1961_s17, %s1569_s30 }
 0x67b   : > { %1413 = vmatpush3.bf16.msra.mxu0 %v1412_v26 }
 0x67c   : > { %1414 = vmatprep.subr.bf16.mxu0 %v1645_v10  ;;  %p1571_p6 = pnand %p1570_p4, %p1794_p12 }
 0x67e   : > { %p1572_p8 = pneg %p1571_p6 }
 0x67f   : > { %1416 = vmatpush3.bf16.msra.mxu0 %v1415_v29 }
 0x6e0   : > { %v848_v11 = vpop.xlane.xlu0 %847 }
 0x6ed   : > { %v677_v12 = vpop.xlane.xlu0 %676 }
 0x6ee   : > { %1505 = vrcp.f32 %v677_v12 }
 0x6ef   : > { %1507 = vrcp.f32 %v848_v11 }
 0x6f1   : > { %v1019_v14 = vpop.xlane.xlu1 %1018  ;;  %v681_v15 = vpop.permute.xlu0 %680 }
 0x6f2   : > { %1370 = vmatpush3.msra.mxu1 %v681_v15  ;;  %1509 = vrcp.f32 %v1019_v14 }
 0x6f3   : > { %1379 = vmatprep.subr.mxu1 %v1647_v13 }
 0x6f5   : > { %v852_v18 = vpop.permute.xlu1 %851 }
 0x6f8   : > { %v1506_v16 = vpop.eup %1505 }
 0x6f9   : > { %v679_v17 = vmul.f32 %v1506_v16, %v1502_v6  ;;  %v1508_v19 = vpop.eup %1507  ;;  %v1023_v22 = vpop.permute.xlu1 %1022 }
 0x6fa   : > { %v850_v20 = vmul.f32 %v1508_v19, %v1500_v63 }
 0x6fb   : > { %1372 = vmatmul.mubr.msk.f32.vlgmr.msra.gmra.mrb[6].mxu1 %vm428_vm2, %v679_v17 }
 0x6fc   : > { %1380 = vmatpush3.msra.mxu1 %v852_v18  ;;  %1381 = vmatprep.mubr.msk.f32.mxu1 %vm1646_vm1, %v1647_v13  ;;  %v1510_v21 = vpop.eup %1509 }
 0x6fd   : > { %1389 = vmatprep.subr.mxu1 %v1647_v13  ;;  %v1021_v23 = vmul.f32 %v1510_v21, %v1504_v8 }
 0x6ff   : > { %1382 = vmatmul.mubr.msk.f32.vlgmr.msra.gmra.mrb[8].mxu1 %vm428_vm2, %v850_v20 }
 0x700   : > { %1390 = vmatpush3.msra.mxu1 %v1023_v22  ;;  %1391 = vmatprep.mubr.msk.f32.mxu1 %vm1646_vm1, %v1647_v13 }
 0x703   : > { %1392 = vmatmul.mubr.msk.f32.vlgmr.msra.gmra.mrb[10].mxu1 %vm428_vm2, %v1021_v23 }
 0x7ce   : > { %v752_v30 = vpop.f32.mrb[6].mxu1 }
 0x7cf   : > { %757 = vrot.lane.b32.xlu1 %v752_v30, %s1659_s9  ;;  %v1373_v31 = vpop.f32.mrb[7].mxu1  ;;  %s1573_s9 = sshll.u32 %s1662_s22, 4  ;;  %s1574_s9 = int_to_ptr.vmem [resolvable:$false] %s1573_s9 }
 0x7d0   : > { %p1576_p10 = scmp.lt.s32.totalorder %s1961_s17, %s1574_s9 }
 0x7d2   : > { %v923_v32 = vpop.f32.mrb[8].mxu1 }
 0x7d3   : > { %928 = vrot.lane.b32.xlu0 %v923_v32, %s1660_s16  ;;  %v1383_v13 = vpop.f32.mrb[9].mxu1  ;;  %s1575_s16 = scalar_lea.vmem %s1574_s9, 256 }
 0x7d4   : > { %p1577_p13 = scmp.lt.s32.totalorder %s1575_s16, %s1569_s30 }
 0x7d6   : > { %v1094_v33 = vpop.f32.mrb[10].mxu1  ;;  %p1578_p3 = por %p1577_p13, %p1576_p10 }
 0x7d7   : > { %1099 = vrot.lane.b32.xlu1 %v1094_v33, %s1661_s14  ;;  %v1393_v34 = vpop.f32.mrb[11].mxu1 }
 0x7d8   : > { %p1579_p7 = pnand %p1578_p3, %p1572_p8 }
 0x841   : > { %v758_v35 = vpop.permute.xlu1 %757 }
 0x842   : > { %761 = vst.msk [vmem:[#allocation2] sm:$0xff] %vm760_vm3, %v758_v35 }
 0x845   : > { %v929_v10 = vpop.permute.xlu0 %928 }
 0x846   : > { %932 = vst.msk [vmem:[#allocation2] sm:$0xff] %vm931_vm4, %v929_v10 }
 0x849   : > { %v1100_v36 = vpop.permute.xlu1 %1099 }
 0x84a   : > { %1103 = vst.msk [vmem:[#allocation2] sm:$0xff] %vm1102_vm5, %v1100_v36 }
 0x851   : > { %v1104_v37 = vld [vmem:[#allocation2] sm:$0xff] }
 0x852   : > { %1403 = vmatmul.mubr.msk.f32.vlgmr.msra.gmra.mrb[6].mxu0 %vm310_vm0, %v1104_v37 }
 0x925   : > { %v1185_v39 = vpop.f32.mrb[6].mxu0 }
 0x926   : > { %v1186_v40 = vadd.f32 %v1311_v38, %v1185_v39  ;;  %v1404_v41 = vpop.f32.mrb[7].mxu0 }
 0x928   : > { %v1189_v42 = vadd.f32 %v1186_v40, %v1853_v0 }
 0x92a   : > { %1190 = vst.msk [vmem:[%s308_s11] sm:$0xff] %vm310_vm0, %v1189_v42 }
 0x92b   : > { %1582 = shalt.err (!%p1579_p7)
}
 0x92c   : > { %s1583_s10 = scalar_lea.hbm %s1959_s23, 128  ;;  %s1587_s29 = scalar_lea.hbm %s2011_s7, 256 }
 0x92d   : > { %p1584_p9 = scmp.ne.s32.totalorder %s1959_s23, %s1583_s10  ;;  %p1588_p0 = scmp.lt.u32.totalorder %s1959_s23, %s2011_s7 }
 0x92e   : > { %p1589_p11 = scmp.lt.u32.totalorder %s1587_s29, %s1583_s10  ;;  %p1591_p4 = scmp.lt.u32.totalorder %s1583_s10, %s1959_s23 }
 0x92f   : > { %p1585_p2 = pnand %p1584_p9, %p1794_p12 }
 0x930   : > { %p1590_p1 = por %p1589_p11, %p1588_p0 }
 0x931   : > { %p1586_p5 = pneg %p1585_p2 }
 0x932   : > { %p1592_p6 = por %p1591_p4, %p1590_p1 }
 0x934   : > { %p1593_p8 = pnand %p1592_p6, %p1586_p5 }
 0x936   : > { %1596 = shalt.err (!%p1593_p8)
}
 0x937   : > { %1423 = dma.vmem_to_hbm [thread:$0]  (%p1794_p12), %s1961_s17, 128, %s1959_s23, %s1192_s28  }
 0x938 PF: > { %s1217_s21 = sand.u32 1, %s1627_s24   ;;  %p2026_p10 = scmp.ne.s32.totalorder %s2016_s8, 0 }
 0x939   : > { %p2027_p13 = scmp.ge.s32.totalorder %s1639_s27, 2  ;;  %s1218_s12 = scalar_lea.sflag [#allocation5], %s1217_s21 }
 0x93b   : > { %p1434_p3 = pnand %p2027_p13, %p2026_p10 }
 0x93d   : > { %1622 = dma.done.wait (!%p1434_p3), %s1218_s12, 128  }
 0x93e   : > { %1624 = vsyncadd (!%p1434_p3), %s1218_s12, 4294967168  ;;  %p21_p7 = scmp.ge.s32.totalorder %s1759_s13, 4   ;;  %s2028_s24 = smov %s1631_s25 }
 0x93f   : > { %s2029_s25 = smov %s1635_s26  ;;  %s2030_s26 = smov %s1790_s18 }
 0x940   : > { %s2031_s27 = smov %s1759_s13  ;;  %23 = sbr.rel (!%p21_p7) target bundleno = 6 (0x6), region = 97 }
 0x947   :  { %1223 = vsyncpa [#allocation4], 1 }
 0x948   :  { %1225 = vsyncpa [#allocation4 + $0x1], 1 }
 0x949   :  { %1226 = vsyncpa [#allocation7], 1 }
 0x94a   :  { %1227 = vsyncpa [#allocation5], 1 }
 0x94b   :  { %1229 = vsyncpa [#allocation5 + $0x1], 1 }

</bundles_post_ra>
